<compile_context>
chip_gen: v6e
topology: v6e:2x2x1
jax: 0.10.0
libtpu: 0.0.40
codegen_flags: <defaults>
</compile_context>

<pallas_src>
import functools

import jax
import jax.numpy as jnp
from jax.experimental import pallas as pl
from jax.experimental.pallas import tpu as pltpu

EPS = 1e-5  # nn.LayerNorm default


def _round_up(n, k):
    return (n + k - 1) // k * k


def _layernorm(x, gamma, beta):
    """LayerNorm over the last axis of a (rows, dim) f32 tile. Row-independent."""
    mean = jnp.mean(x, axis=-1, keepdims=True)
    centered = x - mean
    var = jnp.mean(centered * centered, axis=-1, keepdims=True)
    return centered * jax.lax.rsqrt(var + EPS) * gamma + beta


def vitenc_kernel(x_ref, g1_ref, b1_ref, w1_ref, w2_ref, g2_ref, b2_ref, o_ref):
    # Row tile (tm, mid_dim); LayerNorm math in f32, matmuls bf16 x bf16 -> f32 acc.
    x = x_ref[...].astype(jnp.float32)

    # Hoisted parameter loads (read once, reused).
    g1 = g1_ref[...]
    b1 = b1_ref[...]
    g2 = g2_ref[...]
    b2 = b2_ref[...]

    # norm1 = LayerNorm(mid_dim)
    xn = _layernorm(x, g1, b1)

    # FF(mid_dim -> 2*mid_dim -> emb_dim, bias=False): Linear -> ReLU -> Linear
    h = jnp.dot(xn.astype(jnp.bfloat16), w1_ref[...],
                preferred_element_type=jnp.float32)
    h = jnp.maximum(h, 0.0).astype(jnp.bfloat16)  # fused ReLU + bf16 cast, single pass
    y = jnp.dot(h, w2_ref[...], preferred_element_type=jnp.float32)

    # norm2 = LayerNorm(emb_dim)
    o_ref[...] = _layernorm(y, g2, b2).astype(o_ref.dtype)


def prepare_params(params):
    """One-time parameter prep, hoisted out of the per-call forward path.

    bf16 weights for the MXU (f32 accumulation happens in-kernel) and f32 (1, D)
    gamma/beta rows that broadcast over the row tile.
    """
    g1, b1, w1, w2, g2, b2 = params
    return (g1.astype(jnp.float32).reshape(1, -1),
            b1.astype(jnp.float32).reshape(1, -1),
            w1.astype(jnp.bfloat16),
            w2.astype(jnp.bfloat16),
            g2.astype(jnp.float32).reshape(1, -1),
            b2.astype(jnp.float32).reshape(1, -1))


def _chip_defaults():
    """(default row tile, VMEM-limit cap) by TPU generation."""
    try:
        kind = jax.devices()[0].device_kind.lower()
    except Exception:
        kind = ""
    if "v5" in kind or "v6" in kind:
        return 512, 96 * 1024 * 1024      # 128 MiB physical VMEM
    return 256, 48 * 1024 * 1024          # v7x / unknown: 64 MiB physical, 2 TCs


def _pick_tm(m, default_tm):
    if m <= default_tm:
        if m >= 16:
            # Split into two row blocks so a 2-TensorCore part (v7x) can shard the
            # "parallel" grid axis; costs one extra ~0.35us pipeline step elsewhere.
            return max(8, _round_up(-(-m // 2), 8))
        return m  # single block; block dim == full array dim is legal for any m
    return default_tm


@functools.partial(jax.jit, static_argnames=("tm",))
def vitenc_forward(x, prep, tm=None):
    """x: (..., mid_dim) -> (..., emb_dim).  prep = prepare_params(raw_params)."""
    g1, b1, w1, w2, g2, b2 = prep
    mid_dim = x.shape[-1]
    hid_dim = w1.shape[-1]
    emb_dim = w2.shape[-1]
    lead = x.shape[:-1]
    m = 1
    for d in lead:
        m *= d

    default_tm, vmem_cap = _chip_defaults()
    if tm is None:
        tm = _pick_tm(m, default_tm)
    grid = (pl.cdiv(m, tm),)

    x2 = x.reshape(m, mid_dim)
    itemsize = x2.dtype.itemsize

    # VMEM budget (lane/sublane-padded): x/out tiles double-buffered, weights and
    # gamma/beta single-buffered (pl.Buffered(1)), plus the f32/bf16 intermediates.
    mid_l, hid_l, emb_l = (_round_up(d, 128) for d in (mid_dim, hid_dim, emb_dim))
    tm_l = _round_up(tm, 8)
    vmem_needed = (
        2 * tm_l * mid_l * itemsize                   # x tile, double-buffered
        + 2 * tm_l * emb_l * itemsize                 # out tile, double-buffered
        + (mid_l * hid_l + hid_l * emb_l) * 2         # bf16 weights, single-buffered
        + 2 * (mid_l + emb_l) * 4                     # gamma/beta
        + tm_l * (mid_l + hid_l + emb_l) * 4          # xn, h(f32 MXU out), y
        + tm_l * hid_l * 2                            # h (bf16)
    )
    vmem_limit = min(vmem_cap,
                     max(32 * 1024 * 1024, int(vmem_needed * 1.5) + 4 * 1024 * 1024))

    flops = 2 * m * (mid_dim * hid_dim + hid_dim * emb_dim)
    bytes_accessed = (
        m * mid_dim * itemsize
        + (w1.size + w2.size) * 2
        + (g1.size + b1.size + g2.size + b2.size) * 4
        + m * emb_dim * itemsize)

    const = dict(pipeline_mode=pl.Buffered(1))  # grid-invariant inputs: single buffer
    out = pl.pallas_call(
        vitenc_kernel,
        out_shape=jax.ShapeDtypeStruct((m, emb_dim), x.dtype),
        grid_spec=pltpu.PrefetchScalarGridSpec(
            num_scalar_prefetch=0,
            grid=grid,
            in_specs=[
                pl.BlockSpec((tm, mid_dim), lambda i: (i, 0)),                # x tile
                pl.BlockSpec((1, mid_dim), lambda i: (0, 0), **const),        # gamma1
                pl.BlockSpec((1, mid_dim), lambda i: (0, 0), **const),        # beta1
                pl.BlockSpec((mid_dim, hid_dim), lambda i: (0, 0), **const),  # W1
                pl.BlockSpec((hid_dim, emb_dim), lambda i: (0, 0), **const),  # W2
                pl.BlockSpec((1, emb_dim), lambda i: (0, 0), **const),        # gamma2
                pl.BlockSpec((1, emb_dim), lambda i: (0, 0), **const),        # beta2
            ],
            out_specs=pl.BlockSpec((tm, emb_dim), lambda i: (i, 0)),
        ),
        compiler_params=pltpu.CompilerParams(
            dimension_semantics=("parallel",),
            vmem_limit_bytes=vmem_limit,
        ),
        cost_estimate=pl.CostEstimate(
            flops=flops, transcendentals=2 * m, bytes_accessed=bytes_accessed),
    )(x2, g1, b1, w1, w2, g2, b2)

    return out.reshape(*lead, emb_dim)


def vitenc_reference(x, params):
    """Pure-JAX f32 reference of the same forward pass."""
    g1, b1, w1, w2, g2, b2 = params

    def _ln(v, g, b):
        mean = jnp.mean(v, -1, keepdims=True)
        var = jnp.mean(jnp.square(v - mean), -1, keepdims=True)
        return (v - mean) * jax.lax.rsqrt(var + EPS) * g + b

    x = x.astype(jnp.float32)
    xn = _ln(x, g1, b1)
    h = jnp.maximum(xn @ w1, 0.0)
    y = h @ w2
    return _ln(y, g2, b2)


def init_params(key, mid_dim, emb_dim):
    hid_dim = 2 * mid_dim
    k1, k2, k3, k4, k5, k6 = jax.random.split(key, 6)
    g1 = 1.0 + 0.1 * jax.random.normal(k1, (mid_dim,), jnp.float32)
    b1 = 0.1 * jax.random.normal(k2, (mid_dim,), jnp.float32)
    w1 = jax.random.normal(k3, (mid_dim, hid_dim), jnp.float32) / jnp.sqrt(mid_dim)
    w2 = jax.random.normal(k4, (hid_dim, emb_dim), jnp.float32) / jnp.sqrt(hid_dim)
    g2 = 1.0 + 0.1 * jax.random.normal(k5, (emb_dim,), jnp.float32)
    b2 = 0.1 * jax.random.normal(k6, (emb_dim,), jnp.float32)
    return (g1, b1, w1, w2, g2, b2)


if __name__ == "__main__":
    # Small shapes consistent with the forward: x = (batch, seq, mid_dim).
    # emb_dim=64 deliberately exercises the non-128-multiple (full-extent) output path.
    batch, seq = 2, 8
    mid_dim, emb_dim = 128, 64

    key = jax.random.PRNGKey(0)
    kx, kp = jax.random.split(key)
    x = jax.random.normal(kx, (batch, seq, mid_dim), jnp.float32)
    params = init_params(kp, mid_dim, emb_dim)
    prep = prepare_params(params)   # one-time: bf16 weights, (1, D) gamma/beta

    out = vitenc_forward(x, prep)
    out = jax.block_until_ready(out)

    ref = vitenc_reference(x, params)
    assert out.shape == (batch, seq, emb_dim)
    # bf16 MXU operands (f32 accumulation) -> looser tolerance than pure f32.
    assert jnp.allclose(out, ref, atol=5e-2, rtol=5e-2), (
        f"mismatch vs reference, max abs err={float(jnp.max(jnp.abs(out - ref)))}")

    print("KERNEL_OK")
</pallas_src>

<mosaic_0001>
module attributes {stable_mosaic.version = 11 : i64} {
  func.func @vitenc_kernel(%arg0: i32, %arg1: memref<8x128xf32, #tpu.memory_space<vmem>>, %arg2: memref<1x128xf32, #tpu.memory_space<vmem>>, %arg3: memref<1x128xf32, #tpu.memory_space<vmem>>, %arg4: memref<128x256xbf16, #tpu.memory_space<vmem>>, %arg5: memref<256x64xbf16, #tpu.memory_space<vmem>>, %arg6: memref<1x64xf32, #tpu.memory_space<vmem>>, %arg7: memref<1x64xf32, #tpu.memory_space<vmem>>, %arg8: memref<8x64xf32, #tpu.memory_space<vmem>>) attributes {dimension_semantics = [#tpu.dimension_semantics<parallel>], iteration_bounds = array<i64: 2>, scalar_prefetch = 0 : i64, scratch_operands = 0 : i64, tpu.core_type = #tpu.core_type<tc>, window_params = [{transform_indices = @transform_0, window_bounds = array<i64: 8, 128>}, {pipeline_mode = #tpu.pipeline_mode<synchronous>, transform_indices = @transform_1, window_bounds = array<i64: 1, 128>}, {pipeline_mode = #tpu.pipeline_mode<synchronous>, transform_indices = @transform_2, window_bounds = array<i64: 1, 128>}, {pipeline_mode = #tpu.pipeline_mode<synchronous>, transform_indices = @transform_3, window_bounds = array<i64: 128, 256>}, {pipeline_mode = #tpu.pipeline_mode<synchronous>, transform_indices = @transform_4, window_bounds = array<i64: 256, 64>}, {pipeline_mode = #tpu.pipeline_mode<synchronous>, transform_indices = @transform_5, window_bounds = array<i64: 1, 64>}, {pipeline_mode = #tpu.pipeline_mode<synchronous>, transform_indices = @transform_6, window_bounds = array<i64: 1, 64>}, {transform_indices = @transform_7, window_bounds = array<i64: 8, 64>}]} {
    %c0 = arith.constant 0 : index
    %c0_0 = arith.constant 0 : index
    %0 = vector.load %arg1[%c0, %c0_0] : memref<8x128xf32, #tpu.memory_space<vmem>>, vector<8x128xf32>
    %c0_1 = arith.constant 0 : index
    %c0_2 = arith.constant 0 : index
    %1 = vector.load %arg2[%c0_1, %c0_2] : memref<1x128xf32, #tpu.memory_space<vmem>>, vector<1x128xf32>
    %c0_3 = arith.constant 0 : index
    %c0_4 = arith.constant 0 : index
    %2 = vector.load %arg3[%c0_3, %c0_4] : memref<1x128xf32, #tpu.memory_space<vmem>>, vector<1x128xf32>
    %c0_5 = arith.constant 0 : index
    %c0_6 = arith.constant 0 : index
    %3 = vector.load %arg6[%c0_5, %c0_6] : memref<1x64xf32, #tpu.memory_space<vmem>>, vector<1x64xf32>
    %c0_7 = arith.constant 0 : index
    %c0_8 = arith.constant 0 : index
    %4 = vector.load %arg7[%c0_7, %c0_8] : memref<1x64xf32, #tpu.memory_space<vmem>>, vector<1x64xf32>
    %cst = arith.constant dense<0.000000e+00> : vector<8xf32>
    %5 = vector.multi_reduction <add>, %0, %cst [1] : vector<8x128xf32> to vector<8xf32>
    %6 = vector.shape_cast %5 : vector<8xf32> to vector<8x1xf32>
    %cst_9 = arith.constant 1.280000e+02 : f32
    %7 = vector.broadcast %cst_9 : f32 to vector<8x1xf32>
    %8 = arith.divf %6, %7 : vector<8x1xf32>
    %9 = vector.broadcast %8 : vector<8x1xf32> to vector<8x128xf32>
    %10 = arith.subf %0, %9 : vector<8x128xf32>
    %11 = arith.mulf %10, %10 : vector<8x128xf32>
    %cst_10 = arith.constant dense<0.000000e+00> : vector<8xf32>
    %12 = vector.multi_reduction <add>, %11, %cst_10 [1] : vector<8x128xf32> to vector<8xf32>
    %13 = vector.shape_cast %12 : vector<8xf32> to vector<8x1xf32>
    %cst_11 = arith.constant 1.280000e+02 : f32
    %14 = vector.broadcast %cst_11 : f32 to vector<8x1xf32>
    %15 = arith.divf %13, %14 : vector<8x1xf32>
    %cst_12 = arith.constant 9.99999974E-6 : f32
    %16 = vector.broadcast %cst_12 : f32 to vector<8x1xf32>
    %17 = arith.addf %15, %16 : vector<8x1xf32>
    %18 = math.rsqrt %17 : vector<8x1xf32>
    %19 = vector.broadcast %18 : vector<8x1xf32> to vector<8x128xf32>
    %20 = arith.mulf %10, %19 : vector<8x128xf32>
    %21 = vector.broadcast %1 : vector<1x128xf32> to vector<8x128xf32>
    %22 = arith.mulf %20, %21 : vector<8x128xf32>
    %23 = vector.broadcast %2 : vector<1x128xf32> to vector<8x128xf32>
    %24 = arith.addf %22, %23 : vector<8x128xf32>
    %25 = arith.truncf %24 : vector<8x128xf32> to vector<8x128xbf16>
    %c0_13 = arith.constant 0 : index
    %c0_14 = arith.constant 0 : index
    %26 = vector.load %arg4[%c0_13, %c0_14] : memref<128x256xbf16, #tpu.memory_space<vmem>>, vector<128x256xbf16>
    %cst_15 = arith.constant dense<0.000000e+00> : vector<8x256xf32>
    %27 = tpu.matmul %25, %26, %cst_15 {dimension_numbers = #tpu.dot_dimension_numbers<[1], [0], [0], [1], [0, 0, 1, 1], [], []>} : vector<8x128xbf16>, vector<128x256xbf16>, vector<8x256xf32> -> vector<8x256xf32>
    %cst_16 = arith.constant 0.000000e+00 : f32
    %28 = vector.broadcast %cst_16 : f32 to vector<8x256xf32>
    %29 = arith.maximumf %27, %28 : vector<8x256xf32>
    %30 = arith.truncf %29 : vector<8x256xf32> to vector<8x256xbf16>
    %c0_17 = arith.constant 0 : index
    %c0_18 = arith.constant 0 : index
    %31 = vector.load %arg5[%c0_17, %c0_18] : memref<256x64xbf16, #tpu.memory_space<vmem>>, vector<256x64xbf16>
    %cst_19 = arith.constant dense<0.000000e+00> : vector<8x64xf32>
    %32 = tpu.matmul %30, %31, %cst_19 {dimension_numbers = #tpu.dot_dimension_numbers<[1], [0], [0], [1], [0, 0, 1, 1], [], []>} : vector<8x256xbf16>, vector<256x64xbf16>, vector<8x64xf32> -> vector<8x64xf32>
    %cst_20 = arith.constant dense<0.000000e+00> : vector<8xf32>
    %33 = vector.multi_reduction <add>, %32, %cst_20 [1] : vector<8x64xf32> to vector<8xf32>
    %34 = vector.shape_cast %33 : vector<8xf32> to vector<8x1xf32>
    %cst_21 = arith.constant 6.400000e+01 : f32
    %35 = vector.broadcast %cst_21 : f32 to vector<8x1xf32>
    %36 = arith.divf %34, %35 : vector<8x1xf32>
    %37 = vector.broadcast %36 : vector<8x1xf32> to vector<8x64xf32>
    %38 = arith.subf %32, %37 : vector<8x64xf32>
    %39 = arith.mulf %38, %38 : vector<8x64xf32>
    %cst_22 = arith.constant dense<0.000000e+00> : vector<8xf32>
    %40 = vector.multi_reduction <add>, %39, %cst_22 [1] : vector<8x64xf32> to vector<8xf32>
    %41 = vector.shape_cast %40 : vector<8xf32> to vector<8x1xf32>
    %cst_23 = arith.constant 6.400000e+01 : f32
    %42 = vector.broadcast %cst_23 : f32 to vector<8x1xf32>
    %43 = arith.divf %41, %42 : vector<8x1xf32>
    %cst_24 = arith.constant 9.99999974E-6 : f32
    %44 = vector.broadcast %cst_24 : f32 to vector<8x1xf32>
    %45 = arith.addf %43, %44 : vector<8x1xf32>
    %46 = math.rsqrt %45 : vector<8x1xf32>
    %47 = vector.broadcast %46 : vector<8x1xf32> to vector<8x64xf32>
    %48 = arith.mulf %38, %47 : vector<8x64xf32>
    %49 = vector.broadcast %3 : vector<1x64xf32> to vector<8x64xf32>
    %50 = arith.mulf %48, %49 : vector<8x64xf32>
    %51 = vector.broadcast %4 : vector<1x64xf32> to vector<8x64xf32>
    %52 = arith.addf %50, %51 : vector<8x64xf32>
    %c0_25 = arith.constant 0 : index
    %c0_26 = arith.constant 0 : index
    %53 = vector.load %arg8[%c0_25, %c0_26] : memref<8x64xf32, #tpu.memory_space<vmem>>, vector<8x64xf32>
    tpu.vector_store %arg8[%c0_25, %c0_26], %52 {strides = array<i32>} : memref<8x64xf32, #tpu.memory_space<vmem>>, vector<8x64xf32>,
    return
  }
  func.func @transform_0(%arg0: i32) -> (i32, i32) {
    %c0_i32 = arith.constant 0 : i32
    %c0_i32_0 = arith.constant 0 : i32
    return %arg0, %c0_i32 : i32, i32
  }
  func.func @transform_1(%arg0: i32) -> (i32, i32) {
    %c0_i32 = arith.constant 0 : i32
    %c0_i32_0 = arith.constant 0 : i32
    %c0_i32_1 = arith.constant 0 : i32
    return %c0_i32, %c0_i32_0 : i32, i32
  }
  func.func @transform_2(%arg0: i32) -> (i32, i32) {
    %c0_i32 = arith.constant 0 : i32
    %c0_i32_0 = arith.constant 0 : i32
    %c0_i32_1 = arith.constant 0 : i32
    return %c0_i32, %c0_i32_0 : i32, i32
  }
  func.func @transform_3(%arg0: i32) -> (i32, i32) {
    %c0_i32 = arith.constant 0 : i32
    %c0_i32_0 = arith.constant 0 : i32
    %c0_i32_1 = arith.constant 0 : i32
    return %c0_i32, %c0_i32_0 : i32, i32
  }
  func.func @transform_4(%arg0: i32) -> (i32, i32) {
    %c0_i32 = arith.constant 0 : i32
    %c0_i32_0 = arith.constant 0 : i32
    %c0_i32_1 = arith.constant 0 : i32
    return %c0_i32, %c0_i32_0 : i32, i32
  }
  func.func @transform_5(%arg0: i32) -> (i32, i32) {
    %c0_i32 = arith.constant 0 : i32
    %c0_i32_0 = arith.constant 0 : i32
    %c0_i32_1 = arith.constant 0 : i32
    return %c0_i32, %c0_i32_0 : i32, i32
  }
  func.func @transform_6(%arg0: i32) -> (i32, i32) {
    %c0_i32 = arith.constant 0 : i32
    %c0_i32_0 = arith.constant 0 : i32
    %c0_i32_1 = arith.constant 0 : i32
    return %c0_i32, %c0_i32_0 : i32, i32
  }
  func.func @transform_7(%arg0: i32) -> (i32, i32) {
    %c0_i32 = arith.constant 0 : i32
    %c0_i32_0 = arith.constant 0 : i32
    return %arg0, %c0_i32 : i32, i32
  }
}

</mosaic_0001>

<bundles_post_ra>
// kernel: vitenc_forward.1
= control target key start
LH: loop header
LB: loop body
LE: loop exit
PB: predicated region body
PF: predicated region fallthrough
CT: control target
= control target key end

     0   :  { %12 = vsyncpa [#allocation3], 0  ;;  %s1173_s0 = inlined_call_operand.vmem [shape: f32[16,128], index: 0, kind: input, shape index: {}]   ;;  %s1174_s1 = inlined_call_operand.vmem [shape: f32[1,128], index: 1, kind: input, shape index: {}]   ;;  %s1175_s2 = inlined_call_operand.vmem [shape: f32[1,128], index: 2, kind: input, shape index: {}]   ;;  %s1176_s3 = inlined_call_operand.vmem [shape: bf16[128,256], index: 3, kind: input, shape index: {}]   ;;  %s1177_s4 = inlined_call_operand.vmem [shape: bf16[256,64], index: 4, kind: input, shape index: {}]   ;;  %s1178_s5 = inlined_call_operand.vmem [shape: f32[1,64], index: 5, kind: input, shape index: {}]   ;;  %s1179_s6 = inlined_call_operand.vmem [shape: f32[1,64], index: 6, kind: input, shape index: {}]   ;;  %s1180_s7 = inlined_call_operand.hbm [shape: f32[16,64], index: 7, kind: output, shape index: {}]  }
   0x1   :  { %14 = vsyncpa [#allocation3 + $0x1], 0  ;;  %s975_s24 = smov 0   ;;  %s977_s25 = smov 0  }
   0x2   :  { %s979_s26 = smov 0   ;;  %s981_s27 = smov 0  }
   0x3 LB: > { %s996_s28 = sadd.s32 4294967295, %s931_s27   ;;  %s719_s29 = sadd.s32 4294967294, %s931_s27   ;;  %s931_s27 = sphi %s981_s27, %s1186_s27   ;;  %s927_s26 = sphi %s979_s26, %s1185_s26   ;;  %s923_s25 = sphi %s977_s25, %s1184_s25   ;;  %s919_s24 = sphi %s975_s24, %s1183_s24  }
   0x4   : > { %s1000_s30 = sadd.s32 1, %s931_s27   ;;  %s179_s8 = sadd.s32 1, %s927_s26 }
   0x5   : > { %s176_s9 = ssub.s32 %s931_s27, %s1000_s30  ;;  %p189_p0 = scmp.ne.s32.totalorder %s927_s26, %s923_s25 }
   0x6   : > { %p177_p1 = scmp.eq.s32.totalorder %s176_s9, 0  ;;  %p190_p2 = scmp.eq.s32.totalorder %s996_s28, 1 }
   0x7   : > { %p195_p3 = scmp.ne.s32.totalorder %s923_s25, %s919_s24  ;;  %p196_p4 = scmp.eq.s32.totalorder %s719_s29, 1 }
   0x8   : > { %s1011_s10 = scalar_select %p177_p1, %s927_s26, %s179_s8  }
   0x9   : > { %p1013_p5 = por %p190_p2, %p189_p0  ;;  %p1017_p6 = por %p196_p4, %p195_p3 }
   0xa   : > { %p722_p7 = scmp.ge.s32.totalorder %s931_s27, 1  ;;  %p239_p8 = scmp.lt.s32.totalorder %s931_s27, 3 }
   0xc   : > { %p240_p9 = pnand %p722_p7, %p239_p8 }
   0xd   : > { %p270_p10 = scmp.lt.s32.totalorder (!%p240_p9), %s996_s28, 1  ;;  %s267_s16 = sand.u32 (!%p240_p9), 1, %s923_s25  }
   0xe   : > { %243 = sbr.rel (%p240_p9) target bundleno = 1050 (0x41a), region = 48  ;;  %s762_s22 = sshll.u32 (!%p240_p9), %s996_s28, 7 }
   0xf   : > { %s934_s18 = smov (!%p240_p9), [#allocation2]  }
  0x10   : > { %s875_s19 = sshll.u32 (!%p240_p9), %s934_s18, 4  ;;  %s876_s19 = int_to_ptr.vmem [resolvable:$false] %s875_s19 }
  0x13   : > { %s271_s13 = scalar_select %p270_p10, %s996_s28, 1  ;;  %v827_v1 = vld [vmem:[%s1176_s3 + $0x74] ss:$8 sps:$4 sm:$0xff]   ;;  %v829_v2 = vld [vmem:[%s1176_s3 + $0x70] ss:$8 sps:$4 sm:$0xff]   ;;  %v933_v16 = vmov 0  }
  0x14   : > { %v830_v3 = vld [vmem:[%s1176_s3 + $0x64] ss:$8 sps:$4 sm:$0xff]   ;;  %403 = vmatprep.subr.bf16.mxu0 %v827_v1  ;;  %v832_v4 = vld [vmem:[%s1176_s3 + $0x60] ss:$8 sps:$4 sm:$0xff]   ;;  %v833_v9 = vld [vmem:[%s1176_s3 + $0x54] ss:$8 sps:$4 sm:$0xff]   ;;  %435 = vmatprep.mubr.bf16.mxu0 %v933_v16 }
  0x15   : > { %s724_s14 = sshll.u32 %s271_s13, 3  ;;  %404 = vmatpush1.bf16.msra.mxu0 %v829_v2  ;;  %v835_v10 = vld [vmem:[%s1176_s3 + $0x50] ss:$8 sps:$4 sm:$0xff]   ;;  %v836_v11 = vld [vmem:[%s1176_s3 + $0x44] ss:$8 sps:$4 sm:$0xff]   ;;  %vm616_vm0 = vcmask 523264   ;;  %s658_s13 = scalar_lea.hbm %s1180_s7, %s762_s22 }
  0x16   : > { %s273_s17 = scalar_lea.vmem %s1173_s0, %s724_s14  ;;  %405 = vmatprep.subr.bf16.mxu0 %v830_v3  ;;  %v838_v12 = vld [vmem:[%s1176_s3 + $0x40] ss:$8 sps:$4 sm:$0xff]   ;;  %v839_v13 = vld [vmem:[%s1176_s3 + $0x34] ss:$8 sps:$4 sm:$0xff]   ;;  %v841_v14 = vld [vmem:[%s1176_s3 + $0x30] ss:$8 sps:$4 sm:$0xff]  }
  0x17   : > { %v275_v0 = vld [vmem:[%s273_s17] sm:$0xff]  ;;  %v845_v18 = vld [vmem:[%s1176_s3 + $0x14] ss:$8 sps:$4 sm:$0xff]   ;;  %v847_v19 = vld [vmem:[%s1176_s3 + $0x10] ss:$8 sps:$4 sm:$0xff]   ;;  %s723_s17 = sshll.u32 %s267_s16, 3 }
  0x18   : > { %280 = vadd.xlane.f32.xlu0 %v275_v0  ;;  %v842_v15 = vld [vmem:[%s1176_s3 + $0x24] ss:$8 sps:$4 sm:$0xff]   ;;  %v844_v17 = vld [vmem:[%s1176_s3 + $0x20] ss:$8 sps:$4 sm:$0xff]   ;;  %v851_v22 = vld [vmem:[%s1177_s4 + $0x78] sm:$0xff]   ;;  %s269_s23 = scalar_lea.vmem [#allocation2], %s723_s17 }
  0x19   : > { %406 = vmatpush1.bf16.msra.mxu0 %v832_v4  ;;  %v848_v20 = vld [vmem:[%s1176_s3 + $0x4] ss:$8 sps:$4 sm:$0xff]   ;;  %v850_v21 = vld [vmem:[%s1176_s3] ss:$8 sps:$4 sm:$0xff]   ;;  %v852_v23 = vld [vmem:[%s1177_s4 + $0x38] sm:$0xff]   ;;  %765 = vmatprep.subr.bf16.mxu1 %v851_v22  ;;  %s660_s29 = sshll.u32 %s269_s23, 4  ;;  %s661_s29 = int_to_ptr.vmem [resolvable:$true] %s660_s29 }
  0x1a   : > { %407 = vmatprep.subr.bf16.mxu0 %v833_v9  ;;  %v853_v24 = vld [vmem:[%s1177_s4 + $0x70] sm:$0xff]   ;;  %766 = vmatpush3.bf16.msra.mxu1 %v852_v23  ;;  %v855_v26 = vld [vmem:[%s1177_s4 + $0x68] sm:$0xff]   ;;  %v857_v28 = vld [vmem:[%s1177_s4 + $0x60] sm:$0xff]   ;;  %s647_s14 = scalar_lea.sflag [#allocation3], %s267_s16  ;;  %s871_s15 = scalar_lea.vmem %s661_s29, 128 }
  0x1b   : > { %v854_v25 = vld [vmem:[%s1177_s4 + $0x30] sm:$0xff]   ;;  %767 = vmatprep.subr.bf16.mxu1 %v853_v24  ;;  %v856_v27 = vld [vmem:[%s1177_s4 + $0x28] sm:$0xff]   ;;  %v858_v29 = vld [vmem:[%s1177_s4 + $0x20] sm:$0xff]   ;;  %p872_p11 = scmp.ne.s32.totalorder %s661_s29, %s871_s15  ;;  %s877_s28 = scalar_lea.vmem %s876_s19, 256 }
  0x1c   : > { %v859_v30 = vld [vmem:[%s1177_s4 + $0x58] sm:$0xff]   ;;  %v861_v32 = vld [vmem:[%s1177_s4 + $0x50] sm:$0xff]   ;;  %v725_v38 = vld [vmem:[%s1174_s1] ss:$0 sm:$0xff]  ;;  %p878_p0 = scmp.lt.s32.totalorder %s661_s29, %s876_s19  ;;  %p879_p1 = scmp.lt.s32.totalorder %s877_s28, %s871_s15 }
  0x1d   : > { %408 = vmatpush1.bf16.msra.mxu0 %v835_v10  ;;  %v860_v31 = vld [vmem:[%s1177_s4 + $0x18] sm:$0xff]   ;;  %v862_v33 = vld [vmem:[%s1177_s4 + $0x10] sm:$0xff]   ;;  %v726_v40 = vld [vmem:[%s1175_s2] ss:$0 sm:$0xff]  ;;  %p873_p12 = pnand %p872_p11, %p1013_p5 }
  0x1e   : > { %409 = vmatprep.subr.bf16.mxu0 %v836_v11  ;;  %768 = vmatpush3.bf16.msra.mxu1 %v854_v25  ;;  %v863_v44 = vld [vmem:[%s1177_s4 + $0x48] sm:$0xff]   ;;  %v865_v46 = vld [vmem:[%s1177_s4 + $0x40] sm:$0xff]   ;;  %p880_p2 = por %p879_p1, %p878_p0 }
  0x1f   : > { %769 = vmatprep.subr.bf16.mxu1 %v855_v26  ;;  %v864_v45 = vld [vmem:[%s1177_s4 + $0x8] sm:$0xff]   ;;  %v866_v47 = vld [vmem:[%s1177_s4] sm:$0xff]   ;;  %p874_p13 = pneg %p873_p12 }
  0x20   : > { %v760_v9 = vld [vmem:[%s1179_s6] ss:$0 sm:$0xff] }
  0x21   : > { %410 = vmatpush1.bf16.msra.mxu0 %v838_v12  ;;  %p881_p3 = pnand %p880_p2, %p874_p13 }
  0x22   : > { %411 = vmatprep.subr.bf16.mxu0 %v839_v13  ;;  %770 = vmatpush3.bf16.msra.mxu1 %v856_v27 }
  0x23   : > { %771 = vmatprep.subr.bf16.mxu1 %v857_v28 }
  0x25   : > { %412 = vmatpush1.bf16.msra.mxu0 %v841_v14 }
  0x26   : > { %413 = vmatprep.subr.bf16.mxu0 %v842_v15  ;;  %772 = vmatpush3.bf16.msra.mxu1 %v858_v29 }
  0x27   : > { %773 = vmatprep.subr.bf16.mxu1 %v859_v30 }
  0x29   : > { %414 = vmatpush1.bf16.msra.mxu0 %v844_v17 }
  0x2a   : > { %415 = vmatprep.subr.bf16.mxu0 %v845_v18  ;;  %774 = vmatpush3.bf16.msra.mxu1 %v860_v31 }
  0x2b   : > { %775 = vmatprep.subr.bf16.mxu1 %v861_v32 }
  0x2d   : > { %416 = vmatpush1.bf16.msra.mxu0 %v847_v19 }
  0x2e   : > { %417 = vmatprep.subr.bf16.mxu0 %v848_v20  ;;  %776 = vmatpush3.bf16.msra.mxu1 %v862_v33 }
  0x2f   : > { %777 = vmatprep.subr.bf16.mxu1 %v863_v44 }
  0x31   : > { %418 = vmatpush1.bf16.msra.mxu0 %v850_v21 }
  0x32   : > { %778 = vmatpush3.bf16.msra.mxu1 %v864_v45 }
  0x33   : > { %779 = vmatprep.subr.bf16.mxu1 %v865_v46 }
  0x36   : > { %780 = vmatpush3.bf16.msra.mxu1 %v866_v47 }
  0xa1   : > { %v281_v5 = vpop.xlane.xlu0 %280 }
  0xa2   : > { %v283_v6 = vmul.f32 0.0078125, %v281_v5 }
  0xa4   : > { %v284_v7 = vsub.f32 %v275_v0, %v283_v6 }
  0xa6   : > { %v285_v8 = vmul.f32 %v284_v7, %v284_v7 }
  0xa8   : > { %286 = vadd.xlane.f32.xlu0 %v285_v8 }
 0x131   : > { %v287_v34 = vpop.xlane.xlu0 %286 }
 0x132   : > { %v288_v35 = vmul.f32 0.0078125, %v287_v34 }
 0x134   : > { %v289_v36 = vadd.f32 1e-05, %v288_v35 }
 0x136   : > { %867 = vrsqrt.f32 %v289_v36 }
 0x143   : > { %v868_v37 = vpop.eup %867 }
 0x144   : > { %v291_v39 = vmul.f32 %v868_v37, %v284_v7  ;;  %v759_v7 = vld [vmem:[%s1178_s5] ss:$0 sm:$0xff] }
 0x146   : > { %v298_v41 = vmul.f32 %v725_v38, %v291_v39 }
 0x148   : > { %v305_v42 = vadd.f32 %v726_v40, %v298_v41 }
 0x14a   : > { %v306_v43 = vpack.c.bf16 %v305_v42, %v305_v42 }
 0x14c   : > { %436 = vmatmul.mubr.bf16.vlgmr.msra.gmra.mxu0 %v306_v43 }
 0x20c   : > { %v437_v48 = vpop.f32.mrf.mxu0 }
 0x20d   : > { %v444_v49 = vmax.f32 %v437_v48, 0.0 }
 0x20e   : > { %v439_v50 = vpop.f32.mrf.mxu0 }
 0x20f   : > { %v445_v51 = vmax.f32 %v439_v50, 0.0  ;;  %v446_v54 = vpack.c.bf16 %v444_v49, %v444_v49 }
 0x210   : > { %v441_v52 = vpop.f32.mrf.mxu0 }
 0x211   : > { %v447_v53 = vpack.c.bf16 %v445_v51, %v445_v51 }
 0x212   : > { %v442_v55 = vpop.f32.mrf.mxu0 }
 0x213   : > { %608 = vmatprep.mubr.bf16.mxu1 %v447_v53 }
 0x214   : > { %609 = vmatmul.mubr.bf16.vlgmr.msra.gmra.mxu1 %v446_v54 }
 0x2d4   : > { %v781_v56 = vpop.f32.mrf.mxu1 }
 0x2d6   : > { %v782_v57 = vpop.f32.mrf.mxu1 }
 0x2d7   : > { %v783_v58 = vadd.f32 %v782_v57, %v781_v56 }
 0x2d8   : > { %v784_v59 = vpop.f32.mrf.mxu1 }
 0x2d9   : > { %v617_v60 = vsel %vm616_vm0, %v783_v58, 0.0 }
 0x2da   : > { %v785_v61 = vpop.f32.mrf.mxu1  ;;  %618 = vadd.xlane.f32.xlu1 %v617_v60 }
 0x363   : > { %v619_v62 = vpop.xlane.xlu1 %618 }
 0x364   : > { %v621_v63 = vmul.f32 0.015625, %v619_v62 }
 0x366   : > { %v622_v0 = vsub.f32 %v783_v58, %v621_v63 }
 0x368   : > { %v623_v1 = vmul.f32 %v622_v0, %v622_v0 }
 0x36a   : > { %v624_v2 = vsel %vm616_vm0, %v623_v1, 0.0 }
 0x36b   : > { %625 = vadd.xlane.f32.xlu1 %v624_v2 }
 0x3f4   : > { %v626_v3 = vpop.xlane.xlu1 %625 }
 0x3f5   : > { %v627_v4 = vmul.f32 0.015625, %v626_v3 }
 0x3f7   : > { %v628_v5 = vadd.f32 1e-05, %v627_v4 }
 0x3f9   : > { %869 = vrsqrt.f32 %v628_v5 }
 0x406   : > { %v870_v6 = vpop.eup %869 }
 0x407   : > { %v630_v8 = vmul.f32 %v870_v6, %v622_v0 }
 0x409   : > { %v637_v10 = vmul.f32 %v759_v7, %v630_v8 }
 0x40b   : > { %v644_v11 = vadd.f32 %v760_v9, %v637_v10 }
 0x40d   : > { %645 = vst.msk [vmem:[%s269_s23] sm:$0xff] %vm616_vm0, %v644_v11 }
 0x40e   : > { %884 = shalt.err (!%p881_p3)
}
 0x40f   : > { %s885_s17 = scalar_lea.hbm %s658_s13, 128  ;;  %s889_s21 = scalar_lea.hbm %s1180_s7, 256 }
 0x410   : > { %p886_p4 = scmp.ne.s32.totalorder %s658_s13, %s885_s17  ;;  %p890_p9 = scmp.lt.s32.totalorder %s658_s13, %s1180_s7 }
 0x411   : > { %p891_p10 = scmp.lt.s32.totalorder %s889_s21, %s885_s17 }
 0x412   : > { %p887_p7 = pnand %p886_p4, %p1013_p5 }
 0x413   : > { %p892_p11 = por %p891_p10, %p890_p9 }
 0x414   : > { %p888_p8 = pneg %p887_p7 }
 0x416   : > { %p893_p12 = pnand %p892_p11, %p888_p8 }
 0x418   : > { %896 = shalt.err (!%p893_p12)
}
 0x419   : > { %787 = dma.vmem_to_hbm [thread:$0]  (%p1013_p5), %s661_s29, 128, %s658_s13, %s647_s14  }
 0x41a PF: > { %p793_p13 = scmp.ge.s32.totalorder %s931_s27, 2  ;;  %s672_s8 = sand.u32 1, %s919_s24  }
 0x41b   : > { %s673_s9 = scalar_lea.sflag [#allocation3], %s672_s8 }
 0x41c   : > { %p790_p0 = pnand %p793_p13, %p1017_p6 }
 0x41e   : > { %p791_p1 = pneg %p790_p0 }
 0x420   : > { %914 = dma.done.wait (%p791_p1), %s673_s9, 128  }
 0x421   : > { %916 = vsyncadd (%p791_p1), %s673_s9, 4294967168  ;;  %p17_p2 = scmp.ge.s32.totalorder %s1000_s30, 4   ;;  %s1183_s24 = smov %s923_s25 }
 0x422   : > { %s1184_s25 = smov %s927_s26  ;;  %s1185_s26 = smov %s1011_s10 }
 0x423   : > { %s1186_s27 = smov %s1000_s30  ;;  %19 = sbr.rel (!%p17_p2) target bundleno = 3 (0x3), region = 83 }
 0x428   :  { %678 = vsyncpa [#allocation3], 1 }
 0x429   :  { %680 = vsyncpa [#allocation3 + $0x1], 1 }

</bundles_post_ra>
